<compile_context>
chip_gen: v6e
topology: v6e:2x2x1
jax: 0.10.0
libtpu: 0.0.40
codegen_flags: <defaults>
</compile_context>

<pallas_src>
import jax
import jax.numpy as jnp
from jax import lax
from jax.experimental import pallas as pl
from jax.experimental.pallas import tpu as pltpu


def _vmem_limit_bytes():
    """Generation-aware VMEM limit: ~3/4 of physical capacity.

    v7x (64 MiB physical) -> ~48 MiB (headroom for compiler temporaries),
    v5e/v6e (128 MiB)     -> ~96 MiB (room for larger resident Q/acc tiles).
    """
    try:
        info = pltpu.get_tpu_info()
        cap = getattr(info, "vmem_capacity_bytes", None)
        if cap:
            return int(min(max(cap * 3 // 4, 32 * 1024 * 1024), 128 * 1024 * 1024))
    except Exception:
        pass
    return 48 * 1024 * 1024  # safe fallback on every generation


# ---------------------------------------------------------------------------
# Kernel 1: fused Q/K/V projection  x @ [Wq*scale|Wk|Wv] + [bq*scale|bk|bv]
#           emitting head-major q / k / v directly (no XLA transpose pass).
# ---------------------------------------------------------------------------
def _qkv_proj_kernel(x_ref, w_ref, b_ref, q_ref, k_ref, v_ref):
    # x_ref: (tn, dim) f32   w_ref: (dim, 3*hd) bf16   b_ref: (1, 3*hd) f32
    # q/k/v_ref: (heads, tn, dim_head) bf16  -- head-major outputs.
    heads, _, dh = q_ref.shape
    hd = heads * dh
    x = x_ref[...].astype(jnp.bfloat16)
    y = jnp.dot(x, w_ref[...], preferred_element_type=jnp.float32) + b_ref[...]
    y = y.astype(q_ref.dtype)                       # (tn, 3*hd) bf16, lane-dense
    # Per-head 64-lane slices + stores: this pass is MXU/DMA bound, so the
    # extra slice/store work rides in otherwise idle slots.
    for idx, ref in enumerate((q_ref, k_ref, v_ref)):
        base = idx * hd
        for h in range(heads):
            ref[h, :, :] = y[:, base + h * dh: base + (h + 1) * dh]


# ---------------------------------------------------------------------------
# Kernel 2: flash-style attention + fused (deep) output projection
# ---------------------------------------------------------------------------
def _flash_attn_kernel(q_ref, k_ref, v_ref, wo_ref, bo_ref, o_ref,
                       ml_sc, acc_sc):
    # q_ref:  (heads, tq, dh) bf16  (softmax scale already folded into Wq/bq)
    # k_ref/v_ref: (heads, tk, dh) bf16
    # wo_ref: (hd, dim) bf16        bo_ref: (1, dim) f32
    # o_ref:  (tq, dim)
    # ml_sc:  (heads, tq, 2) f32    lane 0 = running max m, lane 1 = running sum l
    # acc_sc: (heads, tq, dh) f32
    kv_i = pl.program_id(2)
    heads, tq, _ = acc_sc.shape
    lane = lax.broadcasted_iota(jnp.int32, (heads, tq, 2), 2)

    @pl.when(kv_i == 0)
    def _():
        ml_sc[...] = jnp.where(lane == 0, jnp.float32(-jnp.inf), jnp.float32(0.0))
        acc_sc[...] = jnp.zeros_like(acc_sc)

    q = q_ref[...]                          # (heads, tq, dh) bf16 (pre-scaled)
    k = k_ref[...]                          # (heads, tk, dh) bf16
    # scores (heads, tq, tk): contract last dims (no explicit transpose),
    # heads is a batch dim -> feeds the MXU directly.
    s = lax.dot_general(
        q, k,
        dimension_numbers=(((2,), (2,)), ((0,), (0,))),
        preferred_element_type=jnp.float32)

    ml = ml_sc[...]
    m_prev = ml[..., 0:1]
    l_prev = ml[..., 1:2]
    m_new = jnp.maximum(m_prev, jnp.max(s, axis=-1, keepdims=True))
    alpha = jnp.exp(m_prev - m_new)                              # f32 stats
    p = jnp.exp(s - m_new)                                       # (heads, tq, tk) f32
    l_new = alpha * l_prev + jnp.sum(p, axis=-1, keepdims=True)
    pv = lax.dot_general(
        p.astype(jnp.bfloat16), v_ref[...],
        dimension_numbers=(((2,), (1,)), ((0,), (0,))),
        preferred_element_type=jnp.float32)                      # (heads, tq, dh)
    acc_new = alpha * acc_sc[...] + pv
    acc_sc[...] = acc_new
    ml_sc[...] = jnp.where(lane == 0, m_new, l_new)

    @pl.when(kv_i == pl.num_programs(2) - 1)
    def _():
        # Softmax normalisation via EUP approximate reciprocal (no VALU divide).
        o_h = acc_new * pl.reciprocal(l_new, approx=True)        # (heads, tq, dh) f32
        # 'b h n d -> b n (h d)': lane-concat the heads, then ONE deep
        # (tq, hd) @ (hd, dim) projection (contraction depth hd, not dh),
        # no leading-axis head reduce.
        o_flat = jnp.concatenate([o_h[h] for h in range(heads)], axis=-1)
        y = jnp.dot(o_flat.astype(jnp.bfloat16), wo_ref[...],
                    preferred_element_type=jnp.float32) + bo_ref[...]
        o_ref[...] = y.astype(o_ref.dtype)


# ---------------------------------------------------------------------------
# Wrapper
# ---------------------------------------------------------------------------
def attention_pallas(x, params, *, heads, dim_head,
                     q_block=256, kv_block=256, proj_block=256):
    b, n, dim = x.shape
    dh = dim_head
    hd = heads * dim_head
    wq, bq, wk, bk, wv, bv, wo, bo = params

    # Fold the softmax scale (1/sqrt(dim_head)) into the Q projection weights
    # (free), fuse the three projections into one wide matmul, and cast
    # grid-invariant weights to bf16 once, outside the kernels.
    sm_scale = 1.0 / float(dim_head) ** 0.5
    w_qkv = jnp.concatenate([wq * sm_scale, wk, wv], axis=1).astype(jnp.bfloat16)
    b_qkv = jnp.concatenate([bq * sm_scale, bk, bv], axis=1)      # (1, 3*hd) f32
    wo_bf = wo.astype(jnp.bfloat16)                               # (hd, dim)

    tn = min(proj_block, n)
    tq = min(q_block, n)
    tk = min(kv_block, n)
    assert n % tn == 0 and n % tq == 0 and n % tk == 0, "seq must divide tile sizes"
    vmem_limit = _vmem_limit_bytes()

    # ---- pass 1: fused QKV projection -> three head-major bf16 tensors ----
    qkv_shape = jax.ShapeDtypeStruct((b, heads, n, dh), jnp.bfloat16)
    q, k, v = pl.pallas_call(
        _qkv_proj_kernel,
        out_shape=(qkv_shape, qkv_shape, qkv_shape),
        grid_spec=pltpu.PrefetchScalarGridSpec(
            num_scalar_prefetch=0,
            grid=(b, n // tn),
            in_specs=[
                pl.BlockSpec((None, tn, dim), lambda bi, ni: (bi, ni, 0)),
                # grid-invariant weight/bias (constant index_map -> no re-DMA)
                pl.BlockSpec((dim, 3 * hd), lambda bi, ni: (0, 0)),
                pl.BlockSpec((1, 3 * hd), lambda bi, ni: (0, 0)),
            ],
            out_specs=[
                pl.BlockSpec((None, heads, tn, dh), lambda bi, ni: (bi, 0, ni, 0)),
                pl.BlockSpec((None, heads, tn, dh), lambda bi, ni: (bi, 0, ni, 0)),
                pl.BlockSpec((None, heads, tn, dh), lambda bi, ni: (bi, 0, ni, 0)),
            ],
        ),
        compiler_params=pltpu.CompilerParams(
            dimension_semantics=("parallel", "parallel"),
            vmem_limit_bytes=vmem_limit),
        cost_estimate=pl.CostEstimate(
            flops=2 * b * n * dim * 3 * hd,
            transcendentals=0,
            bytes_accessed=(b * n * dim * 4 + dim * 3 * hd * 2 + 3 * hd * 4
                            + 3 * b * heads * n * dh * 2)),
    )(x, w_qkv, b_qkv)

    # ---- pass 2: flash attention + fused output projection ----
    n_q_tiles = n // tq
    out = pl.pallas_call(
        _flash_attn_kernel,
        out_shape=jax.ShapeDtypeStruct((b, n, dim), x.dtype),
        grid_spec=pltpu.PrefetchScalarGridSpec(
            num_scalar_prefetch=0,
            grid=(b, n_q_tiles, n // tk),
            in_specs=[
                pl.BlockSpec((None, heads, tq, dh),
                             lambda bi, qi, ki: (bi, 0, qi, 0)),
                pl.BlockSpec((None, heads, tk, dh),
                             lambda bi, qi, ki: (bi, 0, ki, 0)),
                pl.BlockSpec((None, heads, tk, dh),
                             lambda bi, qi, ki: (bi, 0, ki, 0)),
                pl.BlockSpec((hd, dim), lambda bi, qi, ki: (0, 0)),
                pl.BlockSpec((1, dim), lambda bi, qi, ki: (0, 0)),
            ],
            out_specs=pl.BlockSpec((None, tq, dim), lambda bi, qi, ki: (bi, qi, 0)),
            scratch_shapes=[
                pltpu.VMEM((heads, tq, 2), jnp.float32),     # [m | l] online stats
                pltpu.VMEM((heads, tq, dh), jnp.float32),    # accumulator
            ],
        ),
        compiler_params=pltpu.CompilerParams(
            # batch & q-tile axes parallel (feeds both v7x TensorCores),
            # kv axis is the online-softmax reduction -> arbitrary.
            dimension_semantics=("parallel", "parallel", "arbitrary"),
            vmem_limit_bytes=vmem_limit),
        cost_estimate=pl.CostEstimate(
            flops=b * (4 * heads * n * n * dh + 2 * n * hd * dim),
            transcendentals=b * heads * n * n,
            bytes_accessed=(b * heads * n * dh * 2                     # Q (once)
                            + 2 * b * heads * n * dh * 2 * n_q_tiles   # K/V re-read per q tile
                            + hd * dim * 2 + dim * 4
                            + b * n * dim * 4)),
    )(q, k, v, wo_bf, bo)
    return out


# ---------------------------------------------------------------------------
# Pure-JAX reference (mirrors the PyTorch forward); use_bf16=True mirrors the
# kernel's mixed-precision (bf16 MXU operands, f32 accumulation / stats).
# ---------------------------------------------------------------------------
def attention_reference(x, params, *, heads, dim_head, use_bf16=False):
    wq, bq, wk, bk, wv, bv, wo, bo = params
    b, n, dim = x.shape
    mm_dt = jnp.bfloat16 if use_bf16 else jnp.float32

    def proj(w, bias):
        y = jnp.dot(x.astype(mm_dt), w.astype(mm_dt),
                    preferred_element_type=jnp.float32) + bias
        return y.astype(mm_dt) if use_bf16 else y

    q, k, v = proj(wq, bq), proj(wk, bk), proj(wv, bv)
    split = lambda t: t.reshape(b, n, heads, dim_head).transpose(0, 2, 1, 3)
    q, k, v = split(q), split(k), split(v)
    s = jnp.einsum('bhid,bhjd->bhij', q, k,
                   preferred_element_type=jnp.float32) / (dim_head ** 0.5)
    p = jax.nn.softmax(s, axis=-1)
    o = jnp.einsum('bhij,bhjd->bhid', p.astype(mm_dt), v,
                   preferred_element_type=jnp.float32)
    o = o.transpose(0, 2, 1, 3).reshape(b, n, heads * dim_head)
    return jnp.dot(o.astype(mm_dt), wo.astype(mm_dt),
                   preferred_element_type=jnp.float32) + bo


def init_params(key, dim, heads, dim_head):
    hd = heads * dim_head
    ks = jax.random.split(key, 8)
    scale_in = 1.0 / jnp.sqrt(dim)
    scale_hd = 1.0 / jnp.sqrt(hd)
    wq = jax.random.normal(ks[0], (dim, hd), jnp.float32) * scale_in
    bq = jax.random.normal(ks[1], (1, hd), jnp.float32) * 0.01
    wk = jax.random.normal(ks[2], (dim, hd), jnp.float32) * scale_in
    bk = jax.random.normal(ks[3], (1, hd), jnp.float32) * 0.01
    wv = jax.random.normal(ks[4], (dim, hd), jnp.float32) * scale_in
    bv = jax.random.normal(ks[5], (1, hd), jnp.float32) * 0.01
    wo = jax.random.normal(ks[6], (hd, dim), jnp.float32) * scale_hd
    bo = jax.random.normal(ks[7], (1, dim), jnp.float32) * 0.01
    return (wq, bq, wk, bk, wv, bv, wo, bo)


if __name__ == "__main__":
    # Small shapes consistent with the module: dim=32, heads=8, dim_head=64.
    batch, seq, dim = 2, 8, 32
    heads, dim_head = 8, 64

    key = jax.random.PRNGKey(0)
    kx, kp = jax.random.split(key)
    x = jax.random.normal(kx, (batch, seq, dim), jnp.float32)
    params = init_params(kp, dim, heads, dim_head)

    out = attention_pallas(x, params, heads=heads, dim_head=dim_head)
    out = jax.block_until_ready(out)

    ref_bf16 = attention_reference(x, params, heads=heads, dim_head=dim_head,
                                   use_bf16=True)
    ref_f32 = attention_reference(x, params, heads=heads, dim_head=dim_head,
                                  use_bf16=False)
    assert out.shape == (batch, seq, dim)
    assert jnp.allclose(out, ref_bf16, atol=2e-2, rtol=2e-2), \
        f"matched-precision max err {jnp.max(jnp.abs(out - ref_bf16))}"
    assert jnp.allclose(out, ref_f32, atol=1.5e-1, rtol=1.5e-1), \
        f"f32 max err {jnp.max(jnp.abs(out - ref_f32))}"

    print("KERNEL_OK")
</pallas_src>

<mosaic_0001>
module attributes {stable_mosaic.version = 11 : i64} {
  func.func @_qkv_proj_kernel(%arg0: i32, %arg1: i32, %arg2: memref<1x8x32xf32, #tpu.memory_space<vmem>>, %arg3: memref<32x1536xbf16, #tpu.memory_space<vmem>>, %arg4: memref<1x1536xf32, #tpu.memory_space<vmem>>, %arg5: memref<1x8x8x64xbf16, #tpu.memory_space<vmem>>, %arg6: memref<1x8x8x64xbf16, #tpu.memory_space<vmem>>, %arg7: memref<1x8x8x64xbf16, #tpu.memory_space<vmem>>) attributes {dimension_semantics = [#tpu.dimension_semantics<parallel>, #tpu.dimension_semantics<parallel>], iteration_bounds = array<i64: 2, 1>, scalar_prefetch = 0 : i64, scratch_operands = 0 : i64, tpu.core_type = #tpu.core_type<tc>, window_params = [{transform_indices = @transform_0, window_bounds = array<i64: 1, 8, 32>}, {pipeline_mode = #tpu.pipeline_mode<synchronous>, transform_indices = @transform_1, window_bounds = array<i64: 32, 1536>}, {pipeline_mode = #tpu.pipeline_mode<synchronous>, transform_indices = @transform_2, window_bounds = array<i64: 1, 1536>}, {transform_indices = @transform_3, window_bounds = array<i64: 1, 8, 8, 64>}, {transform_indices = @transform_4, window_bounds = array<i64: 1, 8, 8, 64>}, {transform_indices = @transform_5, window_bounds = array<i64: 1, 8, 8, 64>}]} {
    %c0 = arith.constant 0 : index
    %c0_0 = arith.constant 0 : index
    %c0_1 = arith.constant 0 : index
    %0 = vector.load %arg2[%c0, %c0_0, %c0_1] : memref<1x8x32xf32, #tpu.memory_space<vmem>>, vector<1x8x32xf32>
    %1 = vector.shape_cast %0 : vector<1x8x32xf32> to vector<8x32xf32>
    %2 = arith.truncf %1 : vector<8x32xf32> to vector<8x32xbf16>
    %c0_2 = arith.constant 0 : index
    %c0_3 = arith.constant 0 : index
    %3 = vector.load %arg3[%c0_2, %c0_3] : memref<32x1536xbf16, #tpu.memory_space<vmem>>, vector<32x1536xbf16>
    %cst = arith.constant dense<0.000000e+00> : vector<8x1536xf32>
    %4 = tpu.matmul %2, %3, %cst {dimension_numbers = #tpu.dot_dimension_numbers<[1], [0], [0], [1], [0, 0, 1, 1], [], []>} : vector<8x32xbf16>, vector<32x1536xbf16>, vector<8x1536xf32> -> vector<8x1536xf32>
    %c0_4 = arith.constant 0 : index
    %c0_5 = arith.constant 0 : index
    %5 = vector.load %arg4[%c0_4, %c0_5] : memref<1x1536xf32, #tpu.memory_space<vmem>>, vector<1x1536xf32>
    %6 = vector.broadcast %5 : vector<1x1536xf32> to vector<8x1536xf32>
    %7 = arith.addf %4, %6 : vector<8x1536xf32>
    %8 = arith.truncf %7 : vector<8x1536xf32> to vector<8x1536xbf16>
    %9 = vector.extract_strided_slice %8 {offsets = [0, 0], sizes = [8, 64], strides = [1, 1]} : vector<8x1536xbf16> to vector<8x64xbf16>
    %c0_6 = arith.constant 0 : index
    %c0_7 = arith.constant 0 : index
    %c0_8 = arith.constant 0 : index
    %c0_9 = arith.constant 0 : index
    %10 = vector.load %arg5[%c0_6, %c0_7, %c0_8, %c0_9] : memref<1x8x8x64xbf16, #tpu.memory_space<vmem>>, vector<1x1x8x64xbf16>
    %11 = vector.shape_cast %10 : vector<1x1x8x64xbf16> to vector<8x64xbf16>
    %12 = vector.shape_cast %9 : vector<8x64xbf16> to vector<1x1x8x64xbf16>
    tpu.vector_store %arg5[%c0_6, %c0_7, %c0_8, %c0_9], %12 {strides = array<i32>} : memref<1x8x8x64xbf16, #tpu.memory_space<vmem>>, vector<1x1x8x64xbf16>,
    %13 = vector.extract_strided_slice %8 {offsets = [0, 64], sizes = [8, 64], strides = [1, 1]} : vector<8x1536xbf16> to vector<8x64xbf16>
    %c0_10 = arith.constant 0 : index
    %c1 = arith.constant 1 : index
    %c0_11 = arith.constant 0 : index
    %c0_12 = arith.constant 0 : index
    %14 = vector.load %arg5[%c0_10, %c1, %c0_11, %c0_12] : memref<1x8x8x64xbf16, #tpu.memory_space<vmem>>, vector<1x1x8x64xbf16>
    %15 = vector.shape_cast %14 : vector<1x1x8x64xbf16> to vector<8x64xbf16>
    %16 = vector.shape_cast %13 : vector<8x64xbf16> to vector<1x1x8x64xbf16>
    tpu.vector_store %arg5[%c0_10, %c1, %c0_11, %c0_12], %16 {strides = array<i32>} : memref<1x8x8x64xbf16, #tpu.memory_space<vmem>>, vector<1x1x8x64xbf16>,
    %17 = vector.extract_strided_slice %8 {offsets = [0, 128], sizes = [8, 64], strides = [1, 1]} : vector<8x1536xbf16> to vector<8x64xbf16>
    %c0_13 = arith.constant 0 : index
    %c2 = arith.constant 2 : index
    %c0_14 = arith.constant 0 : index
    %c0_15 = arith.constant 0 : index
    %18 = vector.load %arg5[%c0_13, %c2, %c0_14, %c0_15] : memref<1x8x8x64xbf16, #tpu.memory_space<vmem>>, vector<1x1x8x64xbf16>
    %19 = vector.shape_cast %18 : vector<1x1x8x64xbf16> to vector<8x64xbf16>
    %20 = vector.shape_cast %17 : vector<8x64xbf16> to vector<1x1x8x64xbf16>
    tpu.vector_store %arg5[%c0_13, %c2, %c0_14, %c0_15], %20 {strides = array<i32>} : memref<1x8x8x64xbf16, #tpu.memory_space<vmem>>, vector<1x1x8x64xbf16>,
    %21 = vector.extract_strided_slice %8 {offsets = [0, 192], sizes = [8, 64], strides = [1, 1]} : vector<8x1536xbf16> to vector<8x64xbf16>
    %c0_16 = arith.constant 0 : index
    %c3 = arith.constant 3 : index
    %c0_17 = arith.constant 0 : index
    %c0_18 = arith.constant 0 : index
    %22 = vector.load %arg5[%c0_16, %c3, %c0_17, %c0_18] : memref<1x8x8x64xbf16, #tpu.memory_space<vmem>>, vector<1x1x8x64xbf16>
    %23 = vector.shape_cast %22 : vector<1x1x8x64xbf16> to vector<8x64xbf16>
    %24 = vector.shape_cast %21 : vector<8x64xbf16> to vector<1x1x8x64xbf16>
    tpu.vector_store %arg5[%c0_16, %c3, %c0_17, %c0_18], %24 {strides = array<i32>} : memref<1x8x8x64xbf16, #tpu.memory_space<vmem>>, vector<1x1x8x64xbf16>,
    %25 = vector.extract_strided_slice %8 {offsets = [0, 256], sizes = [8, 64], strides = [1, 1]} : vector<8x1536xbf16> to vector<8x64xbf16>
    %c0_19 = arith.constant 0 : index
    %c4 = arith.constant 4 : index
    %c0_20 = arith.constant 0 : index
    %c0_21 = arith.constant 0 : index
    %26 = vector.load %arg5[%c0_19, %c4, %c0_20, %c0_21] : memref<1x8x8x64xbf16, #tpu.memory_space<vmem>>, vector<1x1x8x64xbf16>
    %27 = vector.shape_cast %26 : vector<1x1x8x64xbf16> to vector<8x64xbf16>
    %28 = vector.shape_cast %25 : vector<8x64xbf16> to vector<1x1x8x64xbf16>
    tpu.vector_store %arg5[%c0_19, %c4, %c0_20, %c0_21], %28 {strides = array<i32>} : memref<1x8x8x64xbf16, #tpu.memory_space<vmem>>, vector<1x1x8x64xbf16>,
    %29 = vector.extract_strided_slice %8 {offsets = [0, 320], sizes = [8, 64], strides = [1, 1]} : vector<8x1536xbf16> to vector<8x64xbf16>
    %c0_22 = arith.constant 0 : index
    %c5 = arith.constant 5 : index
    %c0_23 = arith.constant 0 : index
    %c0_24 = arith.constant 0 : index
    %30 = vector.load %arg5[%c0_22, %c5, %c0_23, %c0_24] : memref<1x8x8x64xbf16, #tpu.memory_space<vmem>>, vector<1x1x8x64xbf16>
    %31 = vector.shape_cast %30 : vector<1x1x8x64xbf16> to vector<8x64xbf16>
    %32 = vector.shape_cast %29 : vector<8x64xbf16> to vector<1x1x8x64xbf16>
    tpu.vector_store %arg5[%c0_22, %c5, %c0_23, %c0_24], %32 {strides = array<i32>} : memref<1x8x8x64xbf16, #tpu.memory_space<vmem>>, vector<1x1x8x64xbf16>,
    %33 = vector.extract_strided_slice %8 {offsets = [0, 384], sizes = [8, 64], strides = [1, 1]} : vector<8x1536xbf16> to vector<8x64xbf16>
    %c0_25 = arith.constant 0 : index
    %c6 = arith.constant 6 : index
    %c0_26 = arith.constant 0 : index
    %c0_27 = arith.constant 0 : index
    %34 = vector.load %arg5[%c0_25, %c6, %c0_26, %c0_27] : memref<1x8x8x64xbf16, #tpu.memory_space<vmem>>, vector<1x1x8x64xbf16>
    %35 = vector.shape_cast %34 : vector<1x1x8x64xbf16> to vector<8x64xbf16>
    %36 = vector.shape_cast %33 : vector<8x64xbf16> to vector<1x1x8x64xbf16>
    tpu.vector_store %arg5[%c0_25, %c6, %c0_26, %c0_27], %36 {strides = array<i32>} : memref<1x8x8x64xbf16, #tpu.memory_space<vmem>>, vector<1x1x8x64xbf16>,
    %37 = vector.extract_strided_slice %8 {offsets = [0, 448], sizes = [8, 64], strides = [1, 1]} : vector<8x1536xbf16> to vector<8x64xbf16>
    %c0_28 = arith.constant 0 : index
    %c7 = arith.constant 7 : index
    %c0_29 = arith.constant 0 : index
    %c0_30 = arith.constant 0 : index
    %38 = vector.load %arg5[%c0_28, %c7, %c0_29, %c0_30] : memref<1x8x8x64xbf16, #tpu.memory_space<vmem>>, vector<1x1x8x64xbf16>
    %39 = vector.shape_cast %38 : vector<1x1x8x64xbf16> to vector<8x64xbf16>
    %40 = vector.shape_cast %37 : vector<8x64xbf16> to vector<1x1x8x64xbf16>
    tpu.vector_store %arg5[%c0_28, %c7, %c0_29, %c0_30], %40 {strides = array<i32>} : memref<1x8x8x64xbf16, #tpu.memory_space<vmem>>, vector<1x1x8x64xbf16>,
    %41 = vector.extract_strided_slice %8 {offsets = [0, 512], sizes = [8, 64], strides = [1, 1]} : vector<8x1536xbf16> to vector<8x64xbf16>
    %c0_31 = arith.constant 0 : index
    %c0_32 = arith.constant 0 : index
    %c0_33 = arith.constant 0 : index
    %c0_34 = arith.constant 0 : index
    %42 = vector.load %arg6[%c0_31, %c0_32, %c0_33, %c0_34] : memref<1x8x8x64xbf16, #tpu.memory_space<vmem>>, vector<1x1x8x64xbf16>
    %43 = vector.shape_cast %42 : vector<1x1x8x64xbf16> to vector<8x64xbf16>
    %44 = vector.shape_cast %41 : vector<8x64xbf16> to vector<1x1x8x64xbf16>
    tpu.vector_store %arg6[%c0_31, %c0_32, %c0_33, %c0_34], %44 {strides = array<i32>} : memref<1x8x8x64xbf16, #tpu.memory_space<vmem>>, vector<1x1x8x64xbf16>,
    %45 = vector.extract_strided_slice %8 {offsets = [0, 576], sizes = [8, 64], strides = [1, 1]} : vector<8x1536xbf16> to vector<8x64xbf16>
    %c0_35 = arith.constant 0 : index
    %c1_36 = arith.constant 1 : index
    %c0_37 = arith.constant 0 : index
    %c0_38 = arith.constant 0 : index
    %46 = vector.load %arg6[%c0_35, %c1_36, %c0_37, %c0_38] : memref<1x8x8x64xbf16, #tpu.memory_space<vmem>>, vector<1x1x8x64xbf16>
    %47 = vector.shape_cast %46 : vector<1x1x8x64xbf16> to vector<8x64xbf16>
    %48 = vector.shape_cast %45 : vector<8x64xbf16> to vector<1x1x8x64xbf16>
    tpu.vector_store %arg6[%c0_35, %c1_36, %c0_37, %c0_38], %48 {strides = array<i32>} : memref<1x8x8x64xbf16, #tpu.memory_space<vmem>>, vector<1x1x8x64xbf16>,
    %49 = vector.extract_strided_slice %8 {offsets = [0, 640], sizes = [8, 64], strides = [1, 1]} : vector<8x1536xbf16> to vector<8x64xbf16>
    %c0_39 = arith.constant 0 : index
    %c2_40 = arith.constant 2 : index
    %c0_41 = arith.constant 0 : index
    %c0_42 = arith.constant 0 : index
    %50 = vector.load %arg6[%c0_39, %c2_40, %c0_41, %c0_42] : memref<1x8x8x64xbf16, #tpu.memory_space<vmem>>, vector<1x1x8x64xbf16>
    %51 = vector.shape_cast %50 : vector<1x1x8x64xbf16> to vector<8x64xbf16>
    %52 = vector.shape_cast %49 : vector<8x64xbf16> to vector<1x1x8x64xbf16>
    tpu.vector_store %arg6[%c0_39, %c2_40, %c0_41, %c0_42], %52 {strides = array<i32>} : memref<1x8x8x64xbf16, #tpu.memory_space<vmem>>, vector<1x1x8x64xbf16>,
    %53 = vector.extract_strided_slice %8 {offsets = [0, 704], sizes = [8, 64], strides = [1, 1]} : vector<8x1536xbf16> to vector<8x64xbf16>
    %c0_43 = arith.constant 0 : index
    %c3_44 = arith.constant 3 : index
    %c0_45 = arith.constant 0 : index
    %c0_46 = arith.constant 0 : index
    %54 = vector.load %arg6[%c0_43, %c3_44, %c0_45, %c0_46] : memref<1x8x8x64xbf16, #tpu.memory_space<vmem>>, vector<1x1x8x64xbf16>
    %55 = vector.shape_cast %54 : vector<1x1x8x64xbf16> to vector<8x64xbf16>
    %56 = vector.shape_cast %53 : vector<8x64xbf16> to vector<1x1x8x64xbf16>
    tpu.vector_store %arg6[%c0_43, %c3_44, %c0_45, %c0_46], %56 {strides = array<i32>} : memref<1x8x8x64xbf16, #tpu.memory_space<vmem>>, vector<1x1x8x64xbf16>,
    %57 = vector.extract_strided_slice %8 {offsets = [0, 768], sizes = [8, 64], strides = [1, 1]} : vector<8x1536xbf16> to vector<8x64xbf16>
    %c0_47 = arith.constant 0 : index
    %c4_48 = arith.constant 4 : index
    %c0_49 = arith.constant 0 : index
    %c0_50 = arith.constant 0 : index
    %58 = vector.load %arg6[%c0_47, %c4_48, %c0_49, %c0_50] : memref<1x8x8x64xbf16, #tpu.memory_space<vmem>>, vector<1x1x8x64xbf16>
    %59 = vector.shape_cast %58 : vector<1x1x8x64xbf16> to vector<8x64xbf16>
    %60 = vector.shape_cast %57 : vector<8x64xbf16> to vector<1x1x8x64xbf16>
    tpu.vector_store %arg6[%c0_47, %c4_48, %c0_49, %c0_50], %60 {strides = array<i32>} : memref<1x8x8x64xbf16, #tpu.memory_space<vmem>>, vector<1x1x8x64xbf16>,
    %61 = vector.extract_strided_slice %8 {offsets = [0, 832], sizes = [8, 64], strides = [1, 1]} : vector<8x1536xbf16> to vector<8x64xbf16>
    %c0_51 = arith.constant 0 : index
    %c5_52 = arith.constant 5 : index
    %c0_53 = arith.constant 0 : index
    %c0_54 = arith.constant 0 : index
    %62 = vector.load %arg6[%c0_51, %c5_52, %c0_53, %c0_54] : memref<1x8x8x64xbf16, #tpu.memory_space<vmem>>, vector<1x1x8x64xbf16>
    %63 = vector.shape_cast %62 : vector<1x1x8x64xbf16> to vector<8x64xbf16>
    %64 = vector.shape_cast %61 : vector<8x64xbf16> to vector<1x1x8x64xbf16>
    tpu.vector_store %arg6[%c0_51, %c5_52, %c0_53, %c0_54], %64 {strides = array<i32>} : memref<1x8x8x64xbf16, #tpu.memory_space<vmem>>, vector<1x1x8x64xbf16>,
    %65 = vector.extract_strided_slice %8 {offsets = [0, 896], sizes = [8, 64], strides = [1, 1]} : vector<8x1536xbf16> to vector<8x64xbf16>
    %c0_55 = arith.constant 0 : index
    %c6_56 = arith.constant 6 : index
    %c0_57 = arith.constant 0 : index
    %c0_58 = arith.constant 0 : index
    %66 = vector.load %arg6[%c0_55, %c6_56, %c0_57, %c0_58] : memref<1x8x8x64xbf16, #tpu.memory_space<vmem>>, vector<1x1x8x64xbf16>
    %67 = vector.shape_cast %66 : vector<1x1x8x64xbf16> to vector<8x64xbf16>
    %68 = vector.shape_cast %65 : vector<8x64xbf16> to vector<1x1x8x64xbf16>
    tpu.vector_store %arg6[%c0_55, %c6_56, %c0_57, %c0_58], %68 {strides = array<i32>} : memref<1x8x8x64xbf16, #tpu.memory_space<vmem>>, vector<1x1x8x64xbf16>,
    %69 = vector.extract_strided_slice %8 {offsets = [0, 960], sizes = [8, 64], strides = [1, 1]} : vector<8x1536xbf16> to vector<8x64xbf16>
    %c0_59 = arith.constant 0 : index
    %c7_60 = arith.constant 7 : index
    %c0_61 = arith.constant 0 : index
    %c0_62 = arith.constant 0 : index
    %70 = vector.load %arg6[%c0_59, %c7_60, %c0_61, %c0_62] : memref<1x8x8x64xbf16, #tpu.memory_space<vmem>>, vector<1x1x8x64xbf16>
    %71 = vector.shape_cast %70 : vector<1x1x8x64xbf16> to vector<8x64xbf16>
    %72 = vector.shape_cast %69 : vector<8x64xbf16> to vector<1x1x8x64xbf16>
    tpu.vector_store %arg6[%c0_59, %c7_60, %c0_61, %c0_62], %72 {strides = array<i32>} : memref<1x8x8x64xbf16, #tpu.memory_space<vmem>>, vector<1x1x8x64xbf16>,
    %73 = vector.extract_strided_slice %8 {offsets = [0, 1024], sizes = [8, 64], strides = [1, 1]} : vector<8x1536xbf16> to vector<8x64xbf16>
    %c0_63 = arith.constant 0 : index
    %c0_64 = arith.constant 0 : index
    %c0_65 = arith.constant 0 : index
    %c0_66 = arith.constant 0 : index
    %74 = vector.load %arg7[%c0_63, %c0_64, %c0_65, %c0_66] : memref<1x8x8x64xbf16, #tpu.memory_space<vmem>>, vector<1x1x8x64xbf16>
    %75 = vector.shape_cast %74 : vector<1x1x8x64xbf16> to vector<8x64xbf16>
    %76 = vector.shape_cast %73 : vector<8x64xbf16> to vector<1x1x8x64xbf16>
    tpu.vector_store %arg7[%c0_63, %c0_64, %c0_65, %c0_66], %76 {strides = array<i32>} : memref<1x8x8x64xbf16, #tpu.memory_space<vmem>>, vector<1x1x8x64xbf16>,
    %77 = vector.extract_strided_slice %8 {offsets = [0, 1088], sizes = [8, 64], strides = [1, 1]} : vector<8x1536xbf16> to vector<8x64xbf16>
    %c0_67 = arith.constant 0 : index
    %c1_68 = arith.constant 1 : index
    %c0_69 = arith.constant 0 : index
    %c0_70 = arith.constant 0 : index
    %78 = vector.load %arg7[%c0_67, %c1_68, %c0_69, %c0_70] : memref<1x8x8x64xbf16, #tpu.memory_space<vmem>>, vector<1x1x8x64xbf16>
    %79 = vector.shape_cast %78 : vector<1x1x8x64xbf16> to vector<8x64xbf16>
    %80 = vector.shape_cast %77 : vector<8x64xbf16> to vector<1x1x8x64xbf16>
    tpu.vector_store %arg7[%c0_67, %c1_68, %c0_69, %c0_70], %80 {strides = array<i32>} : memref<1x8x8x64xbf16, #tpu.memory_space<vmem>>, vector<1x1x8x64xbf16>,
    %81 = vector.extract_strided_slice %8 {offsets = [0, 1152], sizes = [8, 64], strides = [1, 1]} : vector<8x1536xbf16> to vector<8x64xbf16>
    %c0_71 = arith.constant 0 : index
    %c2_72 = arith.constant 2 : index
    %c0_73 = arith.constant 0 : index
    %c0_74 = arith.constant 0 : index
    %82 = vector.load %arg7[%c0_71, %c2_72, %c0_73, %c0_74] : memref<1x8x8x64xbf16, #tpu.memory_space<vmem>>, vector<1x1x8x64xbf16>
    %83 = vector.shape_cast %82 : vector<1x1x8x64xbf16> to vector<8x64xbf16>
    %84 = vector.shape_cast %81 : vector<8x64xbf16> to vector<1x1x8x64xbf16>
    tpu.vector_store %arg7[%c0_71, %c2_72, %c0_73, %c0_74], %84 {strides = array<i32>} : memref<1x8x8x64xbf16, #tpu.memory_space<vmem>>, vector<1x1x8x64xbf16>,
    %85 = vector.extract_strided_slice %8 {offsets = [0, 1216], sizes = [8, 64], strides = [1, 1]} : vector<8x1536xbf16> to vector<8x64xbf16>
    %c0_75 = arith.constant 0 : index
    %c3_76 = arith.constant 3 : index
    %c0_77 = arith.constant 0 : index
    %c0_78 = arith.constant 0 : index
    %86 = vector.load %arg7[%c0_75, %c3_76, %c0_77, %c0_78] : memref<1x8x8x64xbf16, #tpu.memory_space<vmem>>, vector<1x1x8x64xbf16>
    %87 = vector.shape_cast %86 : vector<1x1x8x64xbf16> to vector<8x64xbf16>
    %88 = vector.shape_cast %85 : vector<8x64xbf16> to vector<1x1x8x64xbf16>
    tpu.vector_store %arg7[%c0_75, %c3_76, %c0_77, %c0_78], %88 {strides = array<i32>} : memref<1x8x8x64xbf16, #tpu.memory_space<vmem>>, vector<1x1x8x64xbf16>,
    %89 = vector.extract_strided_slice %8 {offsets = [0, 1280], sizes = [8, 64], strides = [1, 1]} : vector<8x1536xbf16> to vector<8x64xbf16>
    %c0_79 = arith.constant 0 : index
    %c4_80 = arith.constant 4 : index
    %c0_81 = arith.constant 0 : index
    %c0_82 = arith.constant 0 : index
    %90 = vector.load %arg7[%c0_79, %c4_80, %c0_81, %c0_82] : memref<1x8x8x64xbf16, #tpu.memory_space<vmem>>, vector<1x1x8x64xbf16>
    %91 = vector.shape_cast %90 : vector<1x1x8x64xbf16> to vector<8x64xbf16>
    %92 = vector.shape_cast %89 : vector<8x64xbf16> to vector<1x1x8x64xbf16>
    tpu.vector_store %arg7[%c0_79, %c4_80, %c0_81, %c0_82], %92 {strides = array<i32>} : memref<1x8x8x64xbf16, #tpu.memory_space<vmem>>, vector<1x1x8x64xbf16>,
    %93 = vector.extract_strided_slice %8 {offsets = [0, 1344], sizes = [8, 64], strides = [1, 1]} : vector<8x1536xbf16> to vector<8x64xbf16>
    %c0_83 = arith.constant 0 : index
    %c5_84 = arith.constant 5 : index
    %c0_85 = arith.constant 0 : index
    %c0_86 = arith.constant 0 : index
    %94 = vector.load %arg7[%c0_83, %c5_84, %c0_85, %c0_86] : memref<1x8x8x64xbf16, #tpu.memory_space<vmem>>, vector<1x1x8x64xbf16>
    %95 = vector.shape_cast %94 : vector<1x1x8x64xbf16> to vector<8x64xbf16>
    %96 = vector.shape_cast %93 : vector<8x64xbf16> to vector<1x1x8x64xbf16>
    tpu.vector_store %arg7[%c0_83, %c5_84, %c0_85, %c0_86], %96 {strides = array<i32>} : memref<1x8x8x64xbf16, #tpu.memory_space<vmem>>, vector<1x1x8x64xbf16>,
    %97 = vector.extract_strided_slice %8 {offsets = [0, 1408], sizes = [8, 64], strides = [1, 1]} : vector<8x1536xbf16> to vector<8x64xbf16>
    %c0_87 = arith.constant 0 : index
    %c6_88 = arith.constant 6 : index
    %c0_89 = arith.constant 0 : index
    %c0_90 = arith.constant 0 : index
    %98 = vector.load %arg7[%c0_87, %c6_88, %c0_89, %c0_90] : memref<1x8x8x64xbf16, #tpu.memory_space<vmem>>, vector<1x1x8x64xbf16>
    %99 = vector.shape_cast %98 : vector<1x1x8x64xbf16> to vector<8x64xbf16>
    %100 = vector.shape_cast %97 : vector<8x64xbf16> to vector<1x1x8x64xbf16>
    tpu.vector_store %arg7[%c0_87, %c6_88, %c0_89, %c0_90], %100 {strides = array<i32>} : memref<1x8x8x64xbf16, #tpu.memory_space<vmem>>, vector<1x1x8x64xbf16>,
    %101 = vector.extract_strided_slice %8 {offsets = [0, 1472], sizes = [8, 64], strides = [1, 1]} : vector<8x1536xbf16> to vector<8x64xbf16>
    %c0_91 = arith.constant 0 : index
    %c7_92 = arith.constant 7 : index
    %c0_93 = arith.constant 0 : index
    %c0_94 = arith.constant 0 : index
    %102 = vector.load %arg7[%c0_91, %c7_92, %c0_93, %c0_94] : memref<1x8x8x64xbf16, #tpu.memory_space<vmem>>, vector<1x1x8x64xbf16>
    %103 = vector.shape_cast %102 : vector<1x1x8x64xbf16> to vector<8x64xbf16>
    %104 = vector.shape_cast %101 : vector<8x64xbf16> to vector<1x1x8x64xbf16>
    tpu.vector_store %arg7[%c0_91, %c7_92, %c0_93, %c0_94], %104 {strides = array<i32>} : memref<1x8x8x64xbf16, #tpu.memory_space<vmem>>, vector<1x1x8x64xbf16>,
    return
  }
  func.func @transform_0(%arg0: i32, %arg1: i32) -> (i32, i32, i32) {
    %c0_i32 = arith.constant 0 : i32
    %c0_i32_0 = arith.constant 0 : i32
    return %arg0, %arg1, %c0_i32 : i32, i32, i32
  }
  func.func @transform_1(%arg0: i32, %arg1: i32) -> (i32, i32) {
    %c0_i32 = arith.constant 0 : i32
    %c0_i32_0 = arith.constant 0 : i32
    %c0_i32_1 = arith.constant 0 : i32
    return %c0_i32, %c0_i32_0 : i32, i32
  }
  func.func @transform_2(%arg0: i32, %arg1: i32) -> (i32, i32) {
    %c0_i32 = arith.constant 0 : i32
    %c0_i32_0 = arith.constant 0 : i32
    %c0_i32_1 = arith.constant 0 : i32
    return %c0_i32, %c0_i32_0 : i32, i32
  }
  func.func @transform_3(%arg0: i32, %arg1: i32) -> (i32, i32, i32, i32) {
    %c0_i32 = arith.constant 0 : i32
    %c0_i32_0 = arith.constant 0 : i32
    %c0_i32_1 = arith.constant 0 : i32
    return %arg0, %c0_i32, %arg1, %c0_i32_0 : i32, i32, i32, i32
  }
  func.func @transform_4(%arg0: i32, %arg1: i32) -> (i32, i32, i32, i32) {
    %c0_i32 = arith.constant 0 : i32
    %c0_i32_0 = arith.constant 0 : i32
    %c0_i32_1 = arith.constant 0 : i32
    return %arg0, %c0_i32, %arg1, %c0_i32_0 : i32, i32, i32, i32
  }
  func.func @transform_5(%arg0: i32, %arg1: i32) -> (i32, i32, i32, i32) {
    %c0_i32 = arith.constant 0 : i32
    %c0_i32_0 = arith.constant 0 : i32
    %c0_i32_1 = arith.constant 0 : i32
    return %arg0, %c0_i32, %arg1, %c0_i32_0 : i32, i32, i32, i32
  }
}

</mosaic_0001>

<bundles_post_ra>
// kernel: tpu_custom_call.1
= control target key start
LH: loop header
LB: loop body
LE: loop exit
PB: predicated region body
PF: predicated region fallthrough
CT: control target
= control target key end

     0   :  { %s1993_s0 = inlined_call_operand.hbm [shape: f32[2,8,32], index: 0, kind: input, shape index: {}]   ;;  %s1994_s1 = inlined_call_operand.hbm [shape: bf16[32,1536], index: 1, kind: input, shape index: {}]   ;;  %s1995_s2 = inlined_call_operand.hbm [shape: f32[1,1536], index: 2, kind: input, shape index: {}]   ;;  %s1996_s3 = inlined_call_operand.hbm [shape: bf16[2,8,8,64], index: 3, kind: output, shape index: {0}]   ;;  %s1997_s4 = inlined_call_operand.hbm [shape: bf16[2,8,8,64], index: 4, kind: output, shape index: {1}]   ;;  %s1998_s5 = inlined_call_operand.hbm [shape: bf16[2,8,8,64], index: 5, kind: output, shape index: {2}]  }
   0x1   :  { %2001 = sst [smem:[#allocation16_spill]] %s1994_s1 }
   0x2   :  { %11 = vsyncpa [#allocation3], 0 }
   0x3   :  { %13 = vsyncpa [#allocation3 + $0x1], 0 }
   0x4   :  { %14 = vsyncpa [#allocation6], 0 }
   0x5   :  { %15 = vsyncpa [#allocation4], 0 }
   0x6   :  { %17 = vsyncpa [#allocation4 + $0x1], 0 }
   0x7   :  { %18 = vsyncpa [#allocation10], 0 }
   0x8   :  { %20 = vsyncpa [#allocation10 + $0x1], 0  ;;  %s1625_s18 = smov 0   ;;  %s1627_s19 = smov 0  }
   0x9   :  { %s1629_s20 = smov 0   ;;  %s1631_s21 = smov 0  }
   0xa   :  { %s1633_s22 = smov 0   ;;  %s1635_s23 = smov 0  }
   0xb LB: > { %s1656_s24 = sadd.s32 4294967295, %s1582_s23   ;;  %s2000_s25 = sadd.s32 4294967294, %s1582_s23   ;;  %s1582_s23 = sphi %s1635_s23, %s26_s23   ;;  %s1578_s22 = sphi %s1633_s22, %s2020_s22   ;;  %s1574_s21 = sphi %s1631_s21, %s2019_s21   ;;  %s1570_s20 = sphi %s1629_s20, %s2018_s20   ;;  %s1566_s19 = sphi %s1627_s19, %s2017_s19   ;;  %s1562_s18 = sphi %s1625_s18, %s2016_s18  }
   0xc   : > { %p60_p0 = scmp.ne.s32.totalorder %s1566_s19, %s1562_s18  ;;  %p1999_p1 = scmp.eq.s32.totalorder %s1656_s24, 0 }
   0xd   : > { %p134_p3 = scmp.eq.s32.totalorder %s2000_s25, 1  ;;  %p1126_p5 = scmp.ge.s32.totalorder %s1582_s23, 1 }
   0xe   : > { %p1667_p4 = por %p1999_p1, %p60_p0  ;;  %p197_p7 = scmp.lt.s32.totalorder %s1582_s23, 3 }
   0xf   : > { %p1672_p6 = por %p134_p3, %p60_p0  ;;  %s1584_s29 = smov [#allocation5]  }
  0x10   : > { %p1677_p8 = pnand %p1126_p5, %p197_p7  ;;  %s209_s30 = sshll.u32 %s1584_s29, 4  ;;  %s210_s30 = int_to_ptr.vmem [resolvable:$true] %s209_s30 }
  0x11   : > { %s2003_s27 = scalar_select %p1672_p6, 1, 0 }
  0x12   : > { %p1244_p9 = pneg %p1677_p8  ;;  %s1585_s7 = smov [#allocation7]  }
  0x13   : > { %s223_s8 = sshll.u32 %s1585_s7, 4  ;;  %s1373_s9 = scalar_lea.vmem %s210_s30, 3072  ;;  %s224_s8 = int_to_ptr.vmem [resolvable:$true] %s223_s8 }
  0x14   : > { %p1686_p11 = pnand %p1244_p9, %p1999_p1  ;;  %p1374_p13 = scmp.ne.s32.totalorder %s210_s30, %s1373_s9 }
  0x15   : > { %p1381_p5 = scmp.lt.s32.totalorder %s210_s30, %s210_s30  ;;  %p1382_p7 = scmp.lt.s32.totalorder %s1373_s9, %s1373_s9 }
  0x16   : > { %p1364_p12 = pneg %p1686_p11 }
  0x17   : > { %p1383_p10 = por %p1382_p7, %p1381_p5 }
  0x18   : > { %p1376_p0 = pnand %p1374_p13, %p1364_p12 }
  0x1a   : > { %p1377_p3 = pneg %p1376_p0 }
  0x1c   : > { %p1384_p9 = pnand %p1383_p10, %p1377_p3 }
  0x1e   : > { %1387 = shalt.err (!%p1384_p9)
}
  0x1f   : > { %s1586_s10 = smov 768   ;;  %s1587_s11 = smov 48  }
  0x20   : > { %s2006_s1 = sld [smem:[#allocation16_spill]]  ;;  %s1399_s14 = scalar_lea.vmem %s224_s8, 192 }
  0x21   : > { %p1400_p1 = scmp.ne.s32.totalorder %s224_s8, %s1399_s14  ;;  %p1407_p2 = scmp.lt.s32.totalorder %s224_s8, %s224_s8 }
  0x22   : > { %p1408_p6 = scmp.lt.s32.totalorder %s1399_s14, %s1399_s14 }
  0x23   : > { %p1402_p13 = pnand %p1400_p1, %p1364_p12 }
  0x24   : > { %p1409_p5 = por %p1408_p6, %p1407_p2 }
  0x25   : > { %p1403_p0 = pneg %p1402_p13 }
  0x26   : > { %1247 = dma.hbm_to_vmem [thread:$0]  (!%p1686_p11), %s2006_s1, 3072, %s210_s30, [#allocation6], %s1586_s10, %s1586_s10, %s1587_s11  }
  0x27   : > { %p1410_p10 = pnand %p1409_p5, %p1403_p0 }
  0x29   : > { %1413 = shalt.err (!%p1410_p10)
}
  0x2a   : > { %1250 = dma.hbm_to_vmem [thread:$0]  (!%p1686_p11), %s1995_s2, 192, %s224_s8, [#allocation6]  }
  0x2b   : > { %s38_s17 = sadd.s32 1, %s1578_s22  ;;  %s47_s29 = sadd.s32 1, %s1570_s20 }
  0x2c   : > { %p40_p1 = scmp.ge.s32.totalorder %s38_s17, 2  ;;  %p54_p2 = scmp.ne.s32.totalorder %s1570_s20, %s1566_s19 }
  0x2d   : > { %p55_p6 = scmp.eq.s32.totalorder %s1582_s23, 0  ;;  %p1267_p12 = scmp.lt.s32.totalorder %s1582_s23, 2 }
  0x2e   : > { %s2022_s17 = smov (%p40_p1, %s38_s17), 0  ;;  %p2007_p7 = scmp.eq.s32.totalorder %s1656_s24, 1 }
  0x2f   : > { %p56_p3 = por %p55_p6, %p54_p2  ;;  %s42_s6 = ssub.s32 %s1578_s22, %s2022_s17 }
  0x30   : > { %p1718_p9 = por %p2007_p7, %p54_p2  ;;  %s234_s7 = sand.u32 1, %s1570_s20  }
  0x31   : > { %p45_p13 = scmp.eq.s32.totalorder %s42_s6, 0  ;;  %s1130_s8 = sshll.u32 %s234_s7, 3 }
  0x32   : > { %s1131_s9 = sshll.u32 %s1578_s22, 7  ;;  %s238_s14 = scalar_lea.vmem [#allocation2], %s1130_s8 }
  0x33   : > { %s1727_s10 = scalar_select %p45_p13, %s1570_s20, %s47_s29  }
  0x34   : > { %s244_s13 = scalar_lea.hbm %s1993_s0, %s1131_s9  ;;  %s246_s15 = sshll.u32 %s238_s14, 4  ;;  %s247_s15 = int_to_ptr.vmem [resolvable:$true] %s246_s15 }
  0x35   : > { %p1734_p11 = pnand %p1267_p12, %p56_p3  ;;  %s235_s25 = scalar_lea.sflag [#allocation3], %s234_s7 }
  0x36   : > { %s1427_s6 = scalar_lea.vmem %s247_s15, 128  ;;  %s1588_s29 = smov [#allocation2]  }
  0x37   : > { %p1416_p0 = pneg %p1734_p11  ;;  %p1428_p5 = scmp.ne.s32.totalorder %s247_s15, %s1427_s6 }
  0x38   : > { %s1432_s1 = sshll.u32 %s1588_s29, 4  ;;  %s1433_s1 = int_to_ptr.vmem [resolvable:$false] %s1432_s1 }
  0x39   : > { %p1430_p10 = pnand %p1428_p5, %p1416_p0  ;;  %s1434_s9 = scalar_lea.vmem %s1433_s1, 256 }
  0x3a   : > { %p1435_p2 = scmp.lt.s32.totalorder %s247_s15, %s1433_s1  ;;  %p1436_p6 = scmp.lt.s32.totalorder %s1434_s9, %s1427_s6 }
  0x3b   : > { %p1431_p1 = pneg %p1430_p10 }
  0x3c   : > { %p1437_p7 = por %p1436_p6, %p1435_p2 }
  0x3e   : > { %p1438_p12 = pnand %p1437_p7, %p1431_p1 }
  0x40   : > { %1441 = shalt.err (!%p1438_p12)
}
  0x41   : > { %1254 = dma.hbm_to_vmem [thread:$0]  (!%p1734_p11), %s244_s13, 128, %s247_s15, %s235_s25  }
  0x42   : > { %255 = sbr.rel (%p1677_p8) target bundleno = 463 (0x1cf), region = 32  ;;  %s1745_s7 = sand.u32 (!%p1677_p8), 1, %s1566_s19  }
  0x43   : > { %s1133_s8 = sshll.u32 (!%p1677_p8), %s1745_s7, 3  ;;  %s258_s11 = scalar_lea.sflag (!%p1677_p8), [#allocation3], %s1745_s7 }
  0x44   : > { %s261_s12 = scalar_lea.vmem (!%p1677_p8), [#allocation2], %s1133_s8 }
  0x47   : > { %1545 = dma.done.wait (%p1667_p4), %s258_s11, 128  }
  0x48   : > { %1547 = vsyncadd (%p1667_p4), %s258_s11, 4294967168  ;;  %p2010_p3 = scmp.eq.s32.totalorder %s1656_s24, 0 }
  0x4a   : > { %1549 = dma.done.wait (%p2010_p3), [#allocation6], 3264   ;;  %p2011_p13 = pmov %p2010_p3 }
  0x4b   : > { %v1589_v0 = vmov 0   ;;  %v1326_v1 = vld [vmem:[#allocation5 + $0x64] ss:$48 sps:$4 sm:$0xff]   ;;  %v1328_v2 = vld [vmem:[#allocation5 + $0x6c] ss:$48 sps:$4 sm:$0xff]   ;;  %vm517_vm0 = vcmask 261120   ;;  %v337_v27 = vlaneseq }
  0x4c   : > { %1551 = vsyncadd (%p2011_p13), [#allocation6], 4294964032  ;;  %553 = vmatprep.mubr.bf16.mxu0 %v1589_v0  ;;  %594 = vmatprep.mubr.bf16.mxu1 %v1589_v0  ;;  %v1330_v3 = vld [vmem:[#allocation5 + $0x60] ss:$48 sps:$4 sm:$0xff]   ;;  %v1331_v4 = vld [vmem:[#allocation5 + $0x68] ss:$48 sps:$4 sm:$0xff]  }
  0x4d   : > { %533 = vmatprep.subr.bf16.mxu0 %v1326_v1  ;;  %574 = vmatprep.subr.bf16.mxu1 %v1328_v2  ;;  %v1332_v5 = vld [vmem:[#allocation5 + $0x4] ss:$48 sps:$4 sm:$0xff]   ;;  %v1334_v6 = vld [vmem:[#allocation5 + $0xc] ss:$48 sps:$4 sm:$0xff]   ;;  %v1336_v7 = vld [vmem:[#allocation5] ss:$48 sps:$4 sm:$0xff]  }
  0x4e   : > { %534 = vmatpush1.bf16.msra.mxu0 %v1330_v3  ;;  %575 = vmatpush1.bf16.msra.mxu1 %v1331_v4  ;;  %v1337_v8 = vld [vmem:[#allocation5 + $0x8] ss:$48 sps:$4 sm:$0xff]   ;;  %v1338_v10 = vld [vmem:[#allocation5 + $0x70] ss:$48 sps:$4 sm:$0xff]   ;;  %v1340_v11 = vld [vmem:[#allocation5 + $0x74] ss:$48 sps:$4 sm:$0xff]  }
  0x4f   : > { %535 = vmatprep.subr.bf16.mxu0 %v1332_v5  ;;  %v307_v9 = vld [vmem:[%s261_s12] sm:$0xff]  ;;  %576 = vmatprep.subr.bf16.mxu1 %v1334_v6  ;;  %v1763_v28 = vshrl.u32 %v337_v27, 7  ;;  %v333_v31 = vld [vmem:[#allocation7] sm:$0xff]  ;;  %s1774_s1 = sshll.u32 %s1745_s7, 5  ;;  %vm779_vm1 = vcmask 519168   ;;  %s1590_s26 = smov 64  }
  0x50   : > { %v308_v12 = vpack.c.bf16 %v307_v9, %v307_v9  ;;  %v1341_v13 = vld [vmem:[#allocation5 + $0x78] ss:$48 sps:$4 sm:$0xff]   ;;  %v1343_v14 = vld [vmem:[#allocation5 + $0x7c] ss:$48 sps:$4 sm:$0xff]   ;;  %v1346_v15 = vld [vmem:[#allocation5 + $0x14] ss:$48 sps:$4 sm:$0xff]  }
  0x51   : > { %v1349_v16 = vld [vmem:[#allocation5 + $0x1c] ss:$48 sps:$4 sm:$0xff]   ;;  %v1344_v17 = vld [vmem:[#allocation5 + $0x10] ss:$48 sps:$4 sm:$0xff]   ;;  %v1347_v18 = vld [vmem:[#allocation5 + $0x18] ss:$48 sps:$4 sm:$0xff]  }
  0x52   : > { %536 = vmatpush1.bf16.msra.mxu0 %v1336_v7  ;;  %577 = vmatpush1.bf16.msra.mxu1 %v1337_v8  ;;  %v1352_v19 = vld [vmem:[#allocation5 + $0x84] ss:$48 sps:$4 sm:$0xff]   ;;  %v1355_v20 = vld [vmem:[#allocation5 + $0x8c] ss:$48 sps:$4 sm:$0xff]   ;;  %v1350_v21 = vld [vmem:[#allocation5 + $0x80] ss:$48 sps:$4 sm:$0xff]  }
  0x53   : > { %615 = vmatprep.subr.bf16.mxu0 %v1340_v11  ;;  %656 = vmatprep.subr.bf16.mxu1 %v1343_v14  ;;  %v1353_v22 = vld [vmem:[#allocation5 + $0x88] ss:$48 sps:$4 sm:$0xff]   ;;  %v1358_v23 = vld [vmem:[#allocation5 + $0x24] ss:$48 sps:$4 sm:$0xff]   ;;  %v1361_v24 = vld [vmem:[#allocation5 + $0x2c] ss:$48 sps:$4 sm:$0xff]  }
  0x54   : > { %v1356_v25 = vld [vmem:[#allocation5 + $0x20] ss:$48 sps:$4 sm:$0xff]   ;;  %v1359_v26 = vld [vmem:[#allocation5 + $0x28] ss:$48 sps:$4 sm:$0xff]   ;;  %v339_v29 = vsub.s32 0, %v1763_v28  ;;  %v347_v30 = vsub.s32 2, %v1763_v28 }
  0x55   : > { %1163 = vmatmul.mubr.msk.bf16.vlgmr.msra.gmra.mxu0 %vm517_vm0, %v308_v12  ;;  %1164 = vmatmul.mubr.msk.bf16.vlgmr.msra.gmra.mxu1 %vm517_vm0, %v308_v12  ;;  %v343_v32 = vsub.s32 1, %v1763_v28  ;;  %v351_v33 = vsub.s32 3, %v1763_v28  ;;  %v355_v42 = vsub.s32 4, %v1763_v28  ;;  %v363_v43 = vsub.s32 6, %v1763_v28  ;;  %s1785_s25 = scalar_lea.vmem [#allocation8], %s1774_s1  ;;  %s1800_s28 = scalar_lea.vmem [#allocation9], %s1774_s1 }
  0x56   : > { %616 = vmatpush1.bf16.msra.mxu0 %v1338_v10  ;;  %657 = vmatpush1.bf16.msra.mxu1 %v1341_v13  ;;  %v340_v34 = vrot.slane %v333_v31, %v339_v29  ;;  %v348_v35 = vrot.slane %v333_v31, %v347_v30  ;;  %v359_v46 = vsub.s32 5, %v1763_v28  ;;  %v367_v47 = vsub.s32 7, %v1763_v28  ;;  %v334_v4 = vld [vmem:[#allocation7 + $0x8] sm:$0xf]  ;;  %s1823_s13 = scalar_lea.vmem [#allocation11], %s1774_s1  ;;  %s1840_s14 = sshll.u32 %s1574_s21, 9 }
  0x57   : > { %617 = vmatprep.subr.bf16.mxu0 %v1346_v15  ;;  %658 = vmatprep.subr.bf16.mxu1 %v1349_v16  ;;  %v344_v36 = vrot.slane %v333_v31, %v343_v32  ;;  %v352_v37 = vrot.slane %v333_v31, %v351_v33  ;;  %v356_v56 = vrot.slane %v333_v31, %v355_v42  ;;  %s922_s15 = sshll.u32 %s1785_s25, 4  ;;  %s1851_s29 = scalar_lea.hbm %s1996_s3, %s1840_s14  ;;  %s1853_s15 = int_to_ptr.vmem [resolvable:$true] %s922_s15 }
  0x58   : > { %635 = vmatprep.mubr.bf16.mxu0 %v1589_v0  ;;  %676 = vmatprep.mubr.bf16.mxu1 %v1589_v0  ;;  %v364_v57 = vrot.slane %v333_v31, %v363_v43  ;;  %v360_v60 = vrot.slane %v333_v31, %v359_v46  ;;  %v368_v61 = vrot.slane %v333_v31, %v367_v47  ;;  %s1442_s9 = scalar_lea.vmem %s1853_s15, 512  ;;  %s1591_s8 = smov [#allocation8]  }
  0x59   : > { %v372_v13 = vrot.slane %v334_v4, %v339_v29  ;;  %v380_v14 = vrot.slane %v334_v4, %v347_v30  ;;  %p1443_p4 = scmp.ne.s32.totalorder %s1853_s15, %s1442_s9  ;;  %s1446_s11 = sshll.u32 %s1591_s8, 4  ;;  %s1447_s11 = int_to_ptr.vmem [resolvable:$false] %s1446_s11 }
  0x5a   : > { %618 = vmatpush1.bf16.msra.mxu0 %v1344_v17  ;;  %659 = vmatpush1.bf16.msra.mxu1 %v1347_v18  ;;  %v376_v17 = vrot.slane %v334_v4, %v343_v32  ;;  %v384_v18 = vrot.slane %v334_v4, %v351_v33  ;;  %s1448_s12 = scalar_lea.vmem %s1447_s11, 1024  ;;  %p1449_p0 = scmp.lt.s32.totalorder %s1853_s15, %s1447_s11 }
  0x5b   : > { %697 = vmatprep.subr.bf16.mxu0 %v1352_v19  ;;  %738 = vmatprep.subr.bf16.mxu1 %v1355_v20  ;;  %p1444_p8 = pnand %p1443_p4, %p1718_p9  ;;  %p1450_p5 = scmp.lt.s32.totalorder %s1448_s12, %s1442_s9 }
  0x5d   : > { %1165 = vmatmul.mubr.msk.bf16.vlgmr.msra.gmra.mxu0 %vm517_vm0, %v308_v12  ;;  %1166 = vmatmul.mubr.msk.bf16.vlgmr.msra.gmra.mxu1 %vm517_vm0, %v308_v12  ;;  %p1445_p11 = pneg %p1444_p8  ;;  %p1451_p10 = por %p1450_p5, %p1449_p0 }
  0x5e   : > { %698 = vmatpush1.bf16.msra.mxu0 %v1350_v21  ;;  %739 = vmatpush1.bf16.msra.mxu1 %v1353_v22 }
  0x5f   : > { %699 = vmatprep.subr.bf16.mxu0 %v1358_v23  ;;  %740 = vmatprep.subr.bf16.mxu1 %v1361_v24  ;;  %p1452_p1 = pnand %p1451_p10, %p1445_p11 }
  0x60   : > { %717 = vmatprep.mubr.bf16.mxu0 %v1589_v0  ;;  %758 = vmatprep.mubr.bf16.mxu1 %v1589_v0 }
  0x62   : > { %700 = vmatpush1.bf16.msra.mxu0 %v1356_v25  ;;  %741 = vmatpush1.bf16.msra.mxu1 %v1359_v26 }
  0x65   : > { %1167 = vmatmul.mubr.msk.bf16.vlgmr.msra.gmra.mxu0 %vm517_vm0, %v308_v12  ;;  %1168 = vmatmul.mubr.msk.bf16.vlgmr.msra.gmra.mxu1 %vm517_vm0, %v308_v12 }
 0x115   : > { %v555_v38 = vpop.f32.mrf.mxu0  ;;  %v596_v39 = vpop.f32.mrf.mxu1 }
 0x116   : > { %v556_v40 = vadd.f32 %v555_v38, %v340_v34  ;;  %v597_v41 = vadd.f32 %v596_v39, %v348_v35 }
 0x117   : > { %v557_v44 = vpop.f32.mrf.mxu0  ;;  %v598_v45 = vpop.f32.mrf.mxu1 }
 0x118   : > { %v767_v48 = vpack.c.bf16 %v556_v40, %v556_v40  ;;  %v769_v49 = vpack.c.bf16 %v597_v41, %v597_v41  ;;  %v558_v50 = vadd.f32 %v557_v44, %v344_v36  ;;  %v599_v51 = vadd.f32 %v598_v45, %v352_v37 }
 0x119   : > { %v559_v52 = vpop.f32.mrf.mxu0  ;;  %v600_v53 = vpop.f32.mrf.mxu1 }
 0x11a   : > { %780 = vst.msk [vmem:[%s1785_s25] sm:$0xf] %vm779_vm1, %v767_v48  ;;  %1174 = vst.msk [vmem:[%s1785_s25 + $0x10] sm:$0xf] %vm779_vm1, %v769_v49  ;;  %v768_v54 = vpack.c.bf16 %v558_v50, %v558_v50  ;;  %v770_v55 = vpack.c.bf16 %v599_v51, %v599_v51  ;;  %784 = vrot.lane.b32.xlu0 %v767_v48, %s1590_s26 }
 0x11b   : > { %v560_v58 = vpop.f32.mrf.mxu0  ;;  %v601_v59 = vpop.f32.mrf.mxu1 }
 0x11c   : > { %1171 = vst.msk [vmem:[%s1785_s25 + $0x8] sm:$0xf] %vm779_vm1, %v768_v54  ;;  %1177 = vst.msk [vmem:[%s1785_s25 + $0x18] sm:$0xf] %vm779_vm1, %v770_v55  ;;  %794 = vrot.lane.b32.xlu1 %v768_v54, %s1590_s26 }
 0x11d   : > { %v637_v62 = vpop.f32.mrf.mxu0  ;;  %v678_v63 = vpop.f32.mrf.mxu1 }
 0x11e   : > { %v638_v0 = vadd.f32 %v637_v62, %v356_v56  ;;  %v679_v1 = vadd.f32 %v678_v63, %v364_v57  ;;  %804 = vrot.lane.b32.xlu0 %v769_v49, %s1590_s26 }
 0x11f   : > { %v639_v2 = vpop.f32.mrf.mxu0  ;;  %v680_v3 = vpop.f32.mrf.mxu1 }
 0x120   : > { %v771_v5 = vpack.c.bf16 %v638_v0, %v638_v0  ;;  %v773_v6 = vpack.c.bf16 %v679_v1, %v679_v1  ;;  %v640_v7 = vadd.f32 %v639_v2, %v360_v60  ;;  %v681_v8 = vadd.f32 %v680_v3, %v368_v61  ;;  %814 = vrot.lane.b32.xlu1 %v770_v55, %s1590_s26 }
 0x121   : > { %v641_v9 = vpop.f32.mrf.mxu0  ;;  %v682_v10 = vpop.f32.mrf.mxu1 }
 0x122   : > { %819 = vst.msk [vmem:[%s1800_s28] sm:$0xf] %vm779_vm1, %v771_v5  ;;  %1185 = vst.msk [vmem:[%s1800_s28 + $0x10] sm:$0xf] %vm779_vm1, %v773_v6  ;;  %v772_v11 = vpack.c.bf16 %v640_v7, %v640_v7  ;;  %v774_v12 = vpack.c.bf16 %v681_v8, %v681_v8  ;;  %823 = vrot.lane.b32.xlu0 %v771_v5, %s1590_s26 }
 0x123   : > { %v642_v15 = vpop.f32.mrf.mxu0  ;;  %v683_v16 = vpop.f32.mrf.mxu1 }
 0x124   : > { %1182 = vst.msk [vmem:[%s1800_s28 + $0x8] sm:$0xf] %vm779_vm1, %v772_v11  ;;  %1188 = vst.msk [vmem:[%s1800_s28 + $0x18] sm:$0xf] %vm779_vm1, %v774_v12  ;;  %843 = vrot.lane.b32.xlu1 %v773_v6, %s1590_s26 }
 0x125   : > { %v719_v19 = vpop.f32.mrf.mxu0  ;;  %v760_v20 = vpop.f32.mrf.mxu1 }
 0x126   : > { %v720_v21 = vadd.f32 %v719_v19, %v372_v13  ;;  %v761_v22 = vadd.f32 %v760_v20, %v380_v14  ;;  %833 = vrot.lane.b32.xlu0 %v772_v11, %s1590_s26 }
 0x127   : > { %v721_v23 = vpop.f32.mrf.mxu0  ;;  %v762_v24 = vpop.f32.mrf.mxu1 }
 0x128   : > { %v775_v25 = vpack.c.bf16 %v720_v21, %v720_v21  ;;  %v777_v26 = vpack.c.bf16 %v761_v22, %v761_v22  ;;  %v722_v27 = vadd.f32 %v721_v23, %v376_v17  ;;  %v763_v29 = vadd.f32 %v762_v24, %v384_v18  ;;  %853 = vrot.lane.b32.xlu1 %v774_v12, %s1590_s26 }
 0x129   : > { %v723_v30 = vpop.f32.mrf.mxu0  ;;  %v764_v31 = vpop.f32.mrf.mxu1 }
 0x12a   : > { %858 = vst.msk [vmem:[%s1823_s13] sm:$0xf] %vm779_vm1, %v775_v25  ;;  %1196 = vst.msk [vmem:[%s1823_s13 + $0x10] sm:$0xf] %vm779_vm1, %v777_v26  ;;  %v776_v28 = vpack.c.bf16 %v722_v27, %v722_v27  ;;  %v778_v32 = vpack.c.bf16 %v763_v29, %v763_v29  ;;  %862 = vrot.lane.b32.xlu0 %v775_v25, %s1590_s26 }
 0x12b   : > { %v724_v33 = vpop.f32.mrf.mxu0  ;;  %v765_v34 = vpop.f32.mrf.mxu1 }
 0x12c   : > { %1193 = vst.msk [vmem:[%s1823_s13 + $0x8] sm:$0xf] %vm779_vm1, %v776_v28  ;;  %1199 = vst.msk [vmem:[%s1823_s13 + $0x18] sm:$0xf] %vm779_vm1, %v778_v32  ;;  %872 = vrot.lane.b32.xlu1 %v776_v28, %s1590_s26 }
 0x12e   : > { %882 = vrot.lane.b32.xlu0 %v777_v26, %s1590_s26 }
 0x130   : > { %892 = vrot.lane.b32.xlu1 %v778_v32, %s1590_s26 }
 0x18c   : > { %v785_v35 = vpop.permute.xlu0 %784 }
 0x18d   : > { %1170 = vst.msk [vmem:[%s1785_s25 + $0x4] sm:$0xf] %vm779_vm1, %v785_v35 }
 0x18e   : > { %v795_v36 = vpop.permute.xlu1 %794 }
 0x18f   : > { %1173 = vst.msk [vmem:[%s1785_s25 + $0xc] sm:$0xf] %vm779_vm1, %v795_v36 }
 0x190   : > { %v805_v37 = vpop.permute.xlu0 %804 }
 0x191   : > { %1176 = vst.msk [vmem:[%s1785_s25 + $0x14] sm:$0xf] %vm779_vm1, %v805_v37 }
 0x192   : > { %v815_v38 = vpop.permute.xlu1 %814 }
 0x193   : > { %1179 = vst.msk [vmem:[%s1785_s25 + $0x1c] sm:$0xf] %vm779_vm1, %v815_v38 }
 0x194   : > { %v824_v39 = vpop.permute.xlu0 %823 }
 0x195   : > { %1455 = shalt.err (!%p1452_p1)
}
 0x196   : > { %s1456_s1 = scalar_lea.hbm %s1851_s29, 512  ;;  %s1460_s6 = scalar_lea.hbm %s1996_s3, 1024 }
 0x197   : > { %p1457_p2 = scmp.ne.s32.totalorder %s1851_s29, %s1456_s1  ;;  %p1461_p12 = scmp.lt.s32.totalorder %s1851_s29, %s1996_s3 }
 0x198   : > { %p1462_p3 = scmp.lt.s32.totalorder %s1460_s6, %s1456_s1 }
 0x199   : > { %p1458_p6 = pnand %p1457_p2, %p1718_p9 }
 0x19a   : > { %p1463_p13 = por %p1462_p3, %p1461_p12 }
 0x19b   : > { %p1459_p7 = pneg %p1458_p6 }
 0x19d   : > { %p1464_p4 = pnand %p1463_p13, %p1459_p7 }
 0x19f   : > { %1467 = shalt.err (!%p1464_p4)
}
 0x1a0   : > { %s1592_s9 = smov 4   ;;  %s2012_s11 = scalar_lea.sflag [#allocation4], %s1745_s7  ;;  %1181 = vst.msk [vmem:[%s1800_s28 + $0x4] sm:$0xf] %vm779_vm1, %v824_v39  ;;  %v844_v40 = vpop.permute.xlu1 %843  ;;  %v834_v41 = vpop.permute.xlu0 %833 }
 0x1a1   : > { %1238 = dma.vmem_to_hbm [thread:$0]  (%p1718_p9), %s1853_s15, 512, %s1851_s29, %s2012_s11, %s1590_s26, %s1590_s26, %s1592_s9  }
 0x1a2   : > { %s902_s21 = sand.u32 1, %s1656_s24   ;;  %s939_s12 = sshll.u32 %s1800_s28, 4  ;;  %1187 = vst.msk [vmem:[%s1800_s28 + $0x14] sm:$0xf] %vm779_vm1, %v844_v40  ;;  %1184 = vst.msk [vmem:[%s1800_s28 + $0xc] sm:$0xf] %vm779_vm1, %v834_v41  ;;  %s1897_s12 = int_to_ptr.vmem [resolvable:$true] %s939_s12 }
 0x1a3   : > { %s1895_s25 = scalar_lea.hbm %s1997_s4, %s1840_s14  ;;  %s1901_s24 = scalar_lea.sflag [#allocation10], %s902_s21 }
 0x1a4   : > { %v854_v42 = vpop.permute.xlu1 %853  ;;  %v863_v43 = vpop.permute.xlu0 %862  ;;  %s1468_s15 = scalar_lea.vmem %s1897_s12, 512  ;;  %s1593_s29 = smov [#allocation9]  }
 0x1a5   : > { %1190 = vst.msk [vmem:[%s1800_s28 + $0x1c] sm:$0xf] %vm779_vm1, %v854_v42  ;;  %p1469_p8 = scmp.ne.s32.totalorder %s1897_s12, %s1468_s15  ;;  %s1472_s16 = sshll.u32 %s1593_s29, 4  ;;  %s1473_s16 = int_to_ptr.vmem [resolvable:$false] %s1472_s16 }
 0x1a6   : > { %s1474_s6 = scalar_lea.vmem %s1473_s16, 1024  ;;  %p1475_p5 = scmp.lt.s32.totalorder %s1897_s12, %s1473_s16 }
 0x1a7   : > { %p1470_p11 = pnand %p1469_p8, %p1718_p9  ;;  %p1476_p10 = scmp.lt.s32.totalorder %s1474_s6, %s1468_s15 }
 0x1a9   : > { %p1471_p0 = pneg %p1470_p11  ;;  %p1477_p1 = por %p1476_p10, %p1475_p5 }
 0x1ab   : > { %p1478_p2 = pnand %p1477_p1, %p1471_p0 }
 0x1ad   : > { %1481 = shalt.err (!%p1478_p2)
}
 0x1ae   : > { %s1482_s28 = scalar_lea.hbm %s1895_s25, 512  ;;  %s1486_s21 = scalar_lea.hbm %s1997_s4, 1024 }
 0x1af   : > { %p1483_p6 = scmp.ne.s32.totalorder %s1895_s25, %s1482_s28  ;;  %p1487_p3 = scmp.lt.s32.totalorder %s1895_s25, %s1997_s4 }
 0x1b0   : > { %p1488_p13 = scmp.lt.s32.totalorder %s1486_s21, %s1482_s28 }
 0x1b1   : > { %p1484_p7 = pnand %p1483_p6, %p1718_p9 }
 0x1b2   : > { %p1489_p4 = por %p1488_p13, %p1487_p3 }
 0x1b3   : > { %p1485_p12 = pneg %p1484_p7 }
 0x1b5   : > { %p1490_p8 = pnand %p1489_p4, %p1485_p12 }
 0x1b7   : > { %1493 = shalt.err (!%p1490_p8)
}
 0x1b8   : > { %1239 = dma.vmem_to_hbm [thread:$0]  (%p1718_p9), %s1897_s12, 512, %s1895_s25, %s1901_s24, %s1590_s26, %s1590_s26, %s1592_s9   ;;  %v873_v44 = vpop.permute.xlu1 %872  ;;  %v883_v45 = vpop.permute.xlu0 %882 }
 0x1b9   : > { %1192 = vst.msk [vmem:[%s1823_s13 + $0x4] sm:$0xf] %vm779_vm1, %v863_v43  ;;  %s956_s15 = sshll.u32 %s1823_s13, 4  ;;  %1195 = vst.msk [vmem:[%s1823_s13 + $0xc] sm:$0xf] %vm779_vm1, %v873_v44  ;;  %s1940_s6 = scalar_lea.hbm %s1998_s5, %s1840_s14  ;;  %s1932_s15 = int_to_ptr.vmem [resolvable:$true] %s956_s15 }
 0x1ba   : > { %1198 = vst.msk [vmem:[%s1823_s13 + $0x14] sm:$0xf] %vm779_vm1, %v883_v45  ;;  %s1494_s12 = scalar_lea.vmem %s1932_s15, 512  ;;  %s1594_s25 = smov [#allocation11]  }
 0x1bb   : > { %p1495_p11 = scmp.ne.s32.totalorder %s1932_s15, %s1494_s12  ;;  %s1498_s28 = sshll.u32 %s1594_s25, 4  ;;  %s1499_s28 = int_to_ptr.vmem [resolvable:$false] %s1498_s28 }
 0x1bc   : > { %v893_v46 = vpop.permute.xlu1 %892  ;;  %s1500_s8 = scalar_lea.vmem %s1499_s28, 1024  ;;  %p1501_p10 = scmp.lt.s32.totalorder %s1932_s15, %s1499_s28 }
 0x1bd   : > { %1201 = vst.msk [vmem:[%s1823_s13 + $0x1c] sm:$0xf] %vm779_vm1, %v893_v46  ;;  %p1496_p0 = pnand %p1495_p11, %p1718_p9  ;;  %p1502_p1 = scmp.lt.s32.totalorder %s1500_s8, %s1494_s12 }
 0x1bf   : > { %p1497_p5 = pneg %p1496_p0  ;;  %p1503_p2 = por %p1502_p1, %p1501_p10 }
 0x1c1   : > { %p1504_p6 = pnand %p1503_p2, %p1497_p5 }
 0x1c3   : > { %1507 = shalt.err (!%p1504_p6)
}
 0x1c4   : > { %s1508_s14 = scalar_lea.hbm %s1940_s6, 512  ;;  %s1512_s21 = scalar_lea.hbm %s1998_s5, 1024 }
 0x1c5   : > { %p1509_p7 = scmp.ne.s32.totalorder %s1940_s6, %s1508_s14  ;;  %p1513_p13 = scmp.lt.s32.totalorder %s1940_s6, %s1998_s5 }
 0x1c6   : > { %p1514_p4 = scmp.lt.s32.totalorder %s1512_s21, %s1508_s14 }
 0x1c7   : > { %p1510_p12 = pnand %p1509_p7, %p1718_p9 }
 0x1c8   : > { %p1515_p8 = por %p1514_p4, %p1513_p13 }
 0x1c9   : > { %p1511_p3 = pneg %p1510_p12 }
 0x1cb   : > { %p1516_p11 = pnand %p1515_p8, %p1511_p3 }
 0x1cd   : > { %1519 = shalt.err (!%p1516_p11)
}
 0x1ce   : > { %1240 = dma.vmem_to_hbm [thread:$0]  (%p1718_p9), %s1932_s15, 512, %s1940_s6, %s1901_s24, %s1590_s26, %s1590_s26, %s1592_s9  }
 0x1cf PF: > { %s971_s29 = sand.u32 1, %s1562_s18   ;;  %p2013_p0 = scmp.ne.s32.totalorder %s2003_s27, 0 }
 0x1d0   : > { %p2014_p5 = scmp.ge.s32.totalorder %s1582_s23, 2  ;;  %s972_s16 = scalar_lea.sflag [#allocation4], %s971_s29 }
 0x1d2   : > { %p1256_p10 = pnand %p2014_p5, %p2013_p0 }
 0x1d4   : > { %p1257_p1 = pneg %p1256_p10 }
 0x1d6   : > { %1553 = dma.done.wait (%p1257_p1), %s972_s16, 512  }
 0x1d7   : > { %1555 = vsyncadd (%p1257_p1), %s972_s16, 4294966784  ;;  %s2015_s30 = sadd.s32 4294967294, %s1582_s23  }
 0x1d8   : > { %s980_s12 = sand.u32 1, %s2015_s30  }
 0x1d9   : > { %s981_s25 = scalar_lea.sflag [#allocation10], %s980_s12 }
 0x1da   : > { %1557 = dma.done.wait (%p1257_p1), %s981_s25, 1024  }
 0x1db   : > { %1559 = vsyncadd (%p1257_p1), %s981_s25, 4294966272  ;;  %s26_s23 = sadd.s32 1, %s1582_s23   ;;  %s2016_s18 = smov %s1566_s19 }
 0x1dc   : > { %p23_p9 = scmp.ge.s32.totalorder %s26_s23, 4   ;;  %s2017_s19 = smov %s1570_s20 }
 0x1dd   : > { %s2018_s20 = smov %s1727_s10  ;;  %s2019_s21 = smov %s1578_s22 }
 0x1de   : > { %s2020_s22 = smov %s2022_s17  ;;  %25 = sbr.rel (!%p23_p9) target bundleno = 11 (0xb), region = 138 }
 0x1e3   :  { %995 = vsyncpa [#allocation3], 1 }
 0x1e4   :  { %997 = vsyncpa [#allocation3 + $0x1], 1 }
 0x1e5   :  { %998 = vsyncpa [#allocation6], 1 }
 0x1e6   :  { %999 = vsyncpa [#allocation4], 1 }
 0x1e7   :  { %1001 = vsyncpa [#allocation4 + $0x1], 1 }
 0x1e8   :  { %1002 = vsyncpa [#allocation10], 1 }
 0x1e9   :  { %1004 = vsyncpa [#allocation10 + $0x1], 1 }

</bundles_post_ra>
